<compile_context>
chip_gen: v7x
topology: tpu7x:2x2x1
jax: 0.10.0
libtpu: 0.0.40
codegen_flags: <defaults>
</compile_context>

<pallas_src>
import jax
import jax.numpy as jnp
from jax.experimental import pallas as pl
from jax.experimental.pallas import tpu as pltpu


def mean_pool_kernel(h_ref, m_ref, o_ref, acc_ref, cnt_ref):
    # h_ref: (tB, tS, H), m_ref: (tB, tS, 1), o_ref: (tB, H)
    # acc_ref: (tB, H) f32, cnt_ref: (tB, 1) f32
    s = pl.program_id(1)

    @pl.when(s == 0)
    def _init():
        acc_ref[...] = jnp.zeros_like(acc_ref)
        cnt_ref[...] = jnp.zeros_like(cnt_ref)

    m = m_ref[...].astype(jnp.float32)           # (tB, tS, 1)
    h = h_ref[...].astype(jnp.float32)           # (tB, tS, H), widen in vregs
    acc_ref[...] += jnp.sum(h * m, axis=1)       # (tB, H)
    cnt_ref[...] += jnp.sum(m, axis=1)           # (tB, 1)

    @pl.when(s == pl.num_programs(1) - 1)
    def _finalize():
        denom = jnp.maximum(cnt_ref[...], 1e-9)  # torch.clamp(min=1e-9)
        o_ref[...] = (acc_ref[...] / denom).astype(o_ref.dtype)


def _pick_tiles(B, S, H, itemsize):
    # Batch tile: up to 8 rows per step, must divide B exactly.
    tB = 1
    for cand in range(min(B, 8), 0, -1):
        if B % cand == 0:
            tB = cand
            break
    # Sequence tile: cap the h block at ~4 MiB (so double-buffered inputs stay
    # well under the scoped-VMEM default on every generation, incl. v7x).
    budget = (4 * 1024 * 1024) // max(1, tB * H * itemsize)
    if S <= max(budget, 8):
        tS = S
    else:
        tS = S  # fallback: whole sequence if no aligned divisor exists
        cap = max(8, (min(budget, S) // 8) * 8)
        for cand in range(cap, 7, -8):
            if S % cand == 0:
                tS = cand
                break
    return tB, tS


def mean_pooling(last_hidden_state, attention_mask, *, tile_b=None, tile_s=None):
    B, S, H = last_hidden_state.shape
    assert attention_mask.shape == (B, S)

    itemsize = jnp.dtype(last_hidden_state.dtype).itemsize
    auto_tb, auto_ts = _pick_tiles(B, S, H, itemsize)
    tB = tile_b if tile_b is not None else auto_tb
    tS = tile_s if tile_s is not None else auto_ts
    assert B % tB == 0 and S % tS == 0, "tile sizes must divide (B, S)"

    # Mask reshaped so its sequence axis sits on sublanes (same as h's S axis);
    # keep the original dtype and cast inside the kernel.
    mask3 = attention_mask.reshape(B, S, 1)

    grid = (B // tB, S // tS)

    return pl.pallas_call(
        mean_pool_kernel,
        out_shape=jax.ShapeDtypeStruct((B, H), jnp.float32),
        grid_spec=pltpu.PrefetchScalarGridSpec(
            num_scalar_prefetch=0,
            grid=grid,
            in_specs=[
                pl.BlockSpec((tB, tS, H), lambda b, s: (b, s, 0)),
                pl.BlockSpec((tB, tS, 1), lambda b, s: (b, s, 0)),
            ],
            out_specs=pl.BlockSpec((tB, H), lambda b, s: (b, 0)),
            scratch_shapes=[
                pltpu.VMEM((tB, H), jnp.float32),   # running masked sum
                pltpu.VMEM((tB, 1), jnp.float32),   # running mask count
            ],
        ),
        compiler_params=pltpu.CompilerParams(
            dimension_semantics=("parallel", "arbitrary"),
            vmem_limit_bytes=32 * 1024 * 1024,
        ),
    )(last_hidden_state, mask3)


def mean_pooling_ref(last_hidden_state, attention_mask):
    mask = attention_mask[..., None].astype(jnp.float32)
    sum_emb = jnp.sum(last_hidden_state.astype(jnp.float32) * mask, axis=1)
    sum_mask = jnp.maximum(jnp.sum(mask, axis=1), 1e-9)
    return sum_emb / sum_mask


if __name__ == "__main__":
    key = jax.random.PRNGKey(0)
    k1, k2, k3, k4 = jax.random.split(key, 4)

    # Test 1: shapes implied by the module spec (collapses to one grid step).
    B, S, H = 2, 8, 32
    last_hidden_state = jax.random.normal(k1, (B, S, H), dtype=jnp.float32)
    attention_mask = (jax.random.uniform(k2, (B, S)) > 0.3).astype(jnp.int32)

    out = jax.block_until_ready(mean_pooling(last_hidden_state, attention_mask))
    ref = mean_pooling_ref(last_hidden_state, attention_mask)
    assert out.shape == (B, H)
    assert jnp.allclose(out, ref, atol=1e-5, rtol=1e-5), "mismatch vs reference (test 1)"

    # Test 2: exercise the tiled sequence-reduction path (grid > 1 on S).
    B2, S2, H2 = 2, 16, 128
    h2 = jax.random.normal(k3, (B2, S2, H2), dtype=jnp.float32)
    m2 = (jax.random.uniform(k4, (B2, S2)) > 0.5).astype(jnp.int32)

    out2 = jax.block_until_ready(mean_pooling(h2, m2, tile_s=8))
    ref2 = mean_pooling_ref(h2, m2)
    assert jnp.allclose(out2, ref2, atol=1e-5, rtol=1e-5), "mismatch vs reference (test 2)"

    print("KERNEL_OK")
</pallas_src>

<mosaic_0001>
module attributes {stable_mosaic.version = 11 : i64} {
  func.func @mean_pool_kernel(%arg0: i32, %arg1: i32, %arg2: memref<2x8x32xf32, #tpu.memory_space<vmem>>, %arg3: memref<2x8x1xi32, #tpu.memory_space<vmem>>, %arg4: memref<2x32xf32, #tpu.memory_space<vmem>>, %arg5: memref<2x32xf32, #tpu.memory_space<vmem>>, %arg6: memref<2x1xf32, #tpu.memory_space<vmem>>) attributes {dimension_semantics = [#tpu.dimension_semantics<parallel>, #tpu.dimension_semantics<arbitrary>], iteration_bounds = array<i64: 1, 1>, scalar_prefetch = 0 : i64, scratch_operands = 2 : i64, tpu.core_type = #tpu.core_type<tc>, window_params = [{transform_indices = @transform_0, window_bounds = array<i64: 2, 8, 32>}, {transform_indices = @transform_1, window_bounds = array<i64: 2, 8, 1>}, {transform_indices = @transform_2, window_bounds = array<i64: 2, 32>}]} {
    %c0_i32 = arith.constant 0 : i32
    %0 = arith.cmpi eq, %arg1, %c0_i32 : i32
    %1 = arith.extui %0 : i1 to i32
    %c0_i32_0 = arith.constant 0 : i32
    %2 = arith.cmpi ne, %1, %c0_i32_0 : i32
    scf.if %2 {
      %cst_17 = arith.constant 0.000000e+00 : f32
      %19 = vector.broadcast %cst_17 : f32 to vector<2x32xf32>
      %c0_18 = arith.constant 0 : index
      %c0_19 = arith.constant 0 : index
      %20 = vector.load %arg5[%c0_18, %c0_19] : memref<2x32xf32, #tpu.memory_space<vmem>>, vector<2x32xf32>
      tpu.vector_store %arg5[%c0_18, %c0_19], %19 {strides = array<i32>} : memref<2x32xf32, #tpu.memory_space<vmem>>, vector<2x32xf32>,
      %cst_20 = arith.constant 0.000000e+00 : f32
      %21 = vector.broadcast %cst_20 : f32 to vector<2x1xf32>
      %c0_21 = arith.constant 0 : index
      %c0_22 = arith.constant 0 : index
      %22 = vector.load %arg6[%c0_21, %c0_22] : memref<2x1xf32, #tpu.memory_space<vmem>>, vector<2x1xf32>
      tpu.vector_store %arg6[%c0_21, %c0_22], %21 {strides = array<i32>} : memref<2x1xf32, #tpu.memory_space<vmem>>, vector<2x1xf32>,
    } else {
    }
    %c0 = arith.constant 0 : index
    %c0_1 = arith.constant 0 : index
    %c0_2 = arith.constant 0 : index
    %3 = vector.load %arg3[%c0, %c0_1, %c0_2] : memref<2x8x1xi32, #tpu.memory_space<vmem>>, vector<2x8x1xi32>
    %4 = arith.sitofp %3 : vector<2x8x1xi32> to vector<2x8x1xf32>
    %c0_3 = arith.constant 0 : index
    %c0_4 = arith.constant 0 : index
    %c0_5 = arith.constant 0 : index
    %5 = vector.load %arg2[%c0_3, %c0_4, %c0_5] : memref<2x8x32xf32, #tpu.memory_space<vmem>>, vector<2x8x32xf32>
    %c0_6 = arith.constant 0 : index
    %c0_7 = arith.constant 0 : index
    %6 = vector.load %arg5[%c0_6, %c0_7] : memref<2x32xf32, #tpu.memory_space<vmem>>, vector<2x32xf32>
    %7 = vector.broadcast %4 : vector<2x8x1xf32> to vector<2x8x32xf32>
    %8 = arith.mulf %5, %7 : vector<2x8x32xf32>
    %cst = arith.constant dense<0.000000e+00> : vector<2x32xf32>
    %9 = vector.multi_reduction <add>, %8, %cst [1] : vector<2x8x32xf32> to vector<2x32xf32>
    %10 = arith.addf %6, %9 : vector<2x32xf32>
    %c0_8 = arith.constant 0 : index
    %c0_9 = arith.constant 0 : index
    %11 = vector.load %arg5[%c0_8, %c0_9] : memref<2x32xf32, #tpu.memory_space<vmem>>, vector<2x32xf32>
    tpu.vector_store %arg5[%c0_8, %c0_9], %10 {strides = array<i32>} : memref<2x32xf32, #tpu.memory_space<vmem>>, vector<2x32xf32>,
    %c0_10 = arith.constant 0 : index
    %c0_11 = arith.constant 0 : index
    %12 = vector.load %arg6[%c0_10, %c0_11] : memref<2x1xf32, #tpu.memory_space<vmem>>, vector<2x1xf32>
    %cst_12 = arith.constant dense<0.000000e+00> : vector<2x1xf32>
    %13 = vector.multi_reduction <add>, %4, %cst_12 [1] : vector<2x8x1xf32> to vector<2x1xf32>
    %14 = arith.addf %12, %13 : vector<2x1xf32>
    %c0_13 = arith.constant 0 : index
    %c0_14 = arith.constant 0 : index
    %15 = vector.load %arg6[%c0_13, %c0_14] : memref<2x1xf32, #tpu.memory_space<vmem>>, vector<2x1xf32>
    tpu.vector_store %arg6[%c0_13, %c0_14], %14 {strides = array<i32>} : memref<2x1xf32, #tpu.memory_space<vmem>>, vector<2x1xf32>,
    %c0_i32_15 = arith.constant 0 : i32
    %16 = arith.cmpi eq, %arg1, %c0_i32_15 : i32
    %17 = arith.extui %16 : i1 to i32
    %c0_i32_16 = arith.constant 0 : i32
    %18 = arith.cmpi ne, %17, %c0_i32_16 : i32
    scf.if %18 {
      %c0_17 = arith.constant 0 : index
      %c0_18 = arith.constant 0 : index
      %19 = vector.load %arg6[%c0_17, %c0_18] : memref<2x1xf32, #tpu.memory_space<vmem>>, vector<2x1xf32>
      %cst_19 = arith.constant 9.99999971E-10 : f32
      %20 = vector.broadcast %cst_19 : f32 to vector<2x1xf32>
      %21 = arith.maximumf %19, %20 : vector<2x1xf32>
      %c0_20 = arith.constant 0 : index
      %c0_21 = arith.constant 0 : index
      %22 = vector.load %arg5[%c0_20, %c0_21] : memref<2x32xf32, #tpu.memory_space<vmem>>, vector<2x32xf32>
      %23 = vector.broadcast %21 : vector<2x1xf32> to vector<2x32xf32>
      %24 = arith.divf %22, %23 : vector<2x32xf32>
      %c0_22 = arith.constant 0 : index
      %c0_23 = arith.constant 0 : index
      %25 = vector.load %arg4[%c0_22, %c0_23] : memref<2x32xf32, #tpu.memory_space<vmem>>, vector<2x32xf32>
      tpu.vector_store %arg4[%c0_22, %c0_23], %24 {strides = array<i32>} : memref<2x32xf32, #tpu.memory_space<vmem>>, vector<2x32xf32>,
    } else {
    }
    return
  }
  func.func @transform_0(%arg0: i32, %arg1: i32) -> (i32, i32, i32) {
    %c0_i32 = arith.constant 0 : i32
    %c0_i32_0 = arith.constant 0 : i32
    return %arg0, %arg1, %c0_i32 : i32, i32, i32
  }
  func.func @transform_1(%arg0: i32, %arg1: i32) -> (i32, i32, i32) {
    %c0_i32 = arith.constant 0 : i32
    %c0_i32_0 = arith.constant 0 : i32
    return %arg0, %arg1, %c0_i32 : i32, i32, i32
  }
  func.func @transform_2(%arg0: i32, %arg1: i32) -> (i32, i32) {
    %c0_i32 = arith.constant 0 : i32
    %c0_i32_0 = arith.constant 0 : i32
    return %arg0, %c0_i32 : i32, i32
  }
}

</mosaic_0001>

<bundles_post_ra>
// kernel: tpu_custom_call.1
= control target key start
LH: loop header
LB: loop body
LE: loop exit
PB: predicated region body
PF: predicated region fallthrough
CT: control target
= control target key end

     0   :  { %vm63_vm0 = vcmask 7168   ;;  %v144_v2 = vmov 0   ;;  %vm18_vm1 = vcmask 1024   ;;  %s193_s0 = inlined_call_operand.vmem [shape: f32[2,8,32], index: 0, kind: input, shape index: {}]   ;;  %s194_s1 = inlined_call_operand.vmem [shape: s32[2,8,1], index: 1, kind: input, shape index: {}]   ;;  %s195_s2 = inlined_call_operand.hbm [shape: f32[2,32], index: 2, kind: output, shape index: {}]  }
   0x1   :  { %v20_v0 = vld [vmem:[%s194_s1] sm:$0xff]  ;;  %v21_v1 = vld [vmem:[%s194_s1 + $0x8] sm:$0xff]  ;;  %116 = vset.pattern.permute.xlu0 %v144_v2  ;;  %117 = vset.pattern.permute.xlu1 %v144_v2 }
   0x2   :  { %v22_v3 = vcvt.s32.f32 %v20_v0  ;;  %v23_v4 = vcvt.s32.f32 %v21_v1 }
   0x3   :  { %7 = vsyncpa [#allocation5], 0  ;;  %v145_v5 = vmov 0.0   ;;  %vm56_vm2 = vcmask 1041409   ;;  %vm16_vm3 = vcmask 254976   ;;  %v24_v25 = vld [vmem:[%s193_s0] sm:$0xff] }
   0x4   :  { %19 = vst.msk [vmem:[#allocation3] sm:$0x3] %vm18_vm1, %v145_v5  ;;  %29 = vperm.xlu0 %116, %v22_v3   ;;  %v64_v6 = vsel %vm63_vm0, %v22_v3, 0.0  ;;  %v71_v7 = vsel %vm63_vm0, %v23_v4, 0.0  ;;  %vm39_vm4 = vcmask 261120   ;;  %v25_v28 = vld [vmem:[%s193_s0 + $0x8] sm:$0xff] }
   0x5   :  { %v65_v8 = vrot.slane %v64_v6, 4  ;;  %v72_v9 = vrot.slane %v71_v7, 4  ;;  %17 = vst.msk [vmem:[#allocation2] sm:$0x3] %vm16_vm3, %v145_v5  ;;  %s146_s0 = smov [#allocation4]  }
   0x6   :  { %s105_s16 = sshll.u32 %s146_s0, 4  ;;  %s106_s16 = int_to_ptr.vmem [resolvable:$true] %s105_s16 }
   0x7   :  { %v66_v10 = vadd.f32 %v65_v8, %v64_v6  ;;  %v73_v11 = vadd.f32 %v72_v9, %v71_v7  ;;  %s120_s17 = scalar_lea.vmem %s106_s16, 32  ;;  %p125_p1 = scmp.lt.s32.totalorder %s106_s16, %s106_s16 }
   0x8   :  { %34 = vperm.xlu0 %116, %v23_v4   ;;  %p121_p0 = scmp.ne.s32.totalorder %s106_s16, %s120_s17  ;;  %p126_p2 = scmp.lt.s32.totalorder %s120_s17, %s120_s17 }
   0x9   :  { %v67_v12 = vrot.slane %v66_v10, 2  ;;  %v74_v13 = vrot.slane %v73_v11, 2 }
   0xa   :  { %p127_p3 = por %p126_p2, %p125_p1 }
   0xb   :  { %v68_v14 = vadd.f32 %v67_v12, %v66_v10  ;;  %v75_v15 = vadd.f32 %v74_v13, %v73_v11  ;;  %v62_v20 = vld [vmem:[#allocation3] sm:$0x3] }
   0xc   :  { %v26_v45 = vld [vmem:[#allocation2] sm:$0x3]  ;;  %p128_p4 = pnand %p127_p3, %p121_p0 }
   0xd   :  { %v69_v16 = vrot.slane %v68_v14, 1  ;;  %v76_v17 = vrot.slane %v75_v15, 1 }
   0xf   :  { %v70_v18 = vadd.f32 %v69_v16, %v68_v14  ;;  %v77_v19 = vadd.f32 %v76_v17, %v75_v15 }
  0x11   :  { %v80_v21 = vsel %vm56_vm2, %v77_v19, %v70_v18 }
  0x12   :  { %v82_v22 = vadd.f32 %v80_v21, %v62_v20 }
  0x14   :  { %84 = vst.msk [vmem:[#allocation3] sm:$0x3] %vm18_vm1, %v82_v22 }
  0x1b   :  { %v88_v23 = vld [vmem:[#allocation3] sm:$0x3] }
  0x1c   :  { %v89_v24 = vmax.f32 %v88_v23, 1e-09 }
  0x1e   :  { %93 = vperm.xlu1 %117, %v89_v24  }
  0x83   :  { %v30_v26 = vpop.permute.xlu0 %29 }
  0x84   :  { %v37_v27 = vmul.f32 %v30_v26, %v24_v25 }
  0x86   :  { %v40_v29 = vsel %vm39_vm4, %v37_v27, 0.0 }
  0x87   :  { %v41_v30 = vrot.slane %v40_v29, 4  ;;  %v35_v31 = vpop.permute.xlu0 %34 }
  0x88   :  { %v38_v32 = vmul.f32 %v35_v31, %v25_v28 }
  0x89   :  { %v42_v33 = vadd.f32 %v41_v30, %v40_v29 }
  0x8a   :  { %v47_v34 = vsel %vm39_vm4, %v38_v32, 0.0 }
  0x8b   :  { %v43_v35 = vrot.slane %v42_v33, 2  ;;  %v48_v36 = vrot.slane %v47_v34, 4 }
  0x8d   :  { %v44_v37 = vadd.f32 %v43_v35, %v42_v33  ;;  %v49_v38 = vadd.f32 %v48_v36, %v47_v34 }
  0x8f   :  { %v50_v39 = vrot.slane %v49_v38, 2  ;;  %v45_v40 = vrot.slane %v44_v37, 1 }
  0x91   :  { %v51_v41 = vadd.f32 %v50_v39, %v49_v38  ;;  %v46_v43 = vadd.f32 %v45_v40, %v44_v37 }
  0x93   :  { %v52_v42 = vrot.slane %v51_v41, 1 }
  0x95   :  { %v53_v44 = vadd.f32 %v52_v42, %v51_v41 }
  0x97   :  { %v57_v46 = vsel %vm56_vm2, %v53_v44, %v46_v43 }
  0x98   :  { %v59_v47 = vadd.f32 %v57_v46, %v26_v45 }
  0x9a   :  { %61 = vst.msk [vmem:[#allocation2] sm:$0x3] %vm16_vm3, %v59_v47 }
  0x9d   :  { %v94_v48 = vpop.permute.xlu1 %93 }
  0x9e   :  { %118 = vrcp.f32 %v94_v48 }
  0xa1   :  { %v90_v50 = vld [vmem:[#allocation2] sm:$0x3] }
  0xa8   :  { %v119_v49 = vpop.eup %118 }
  0xa9   :  { %v97_v51 = vmul.f32 %v119_v49, %v90_v50 }
  0xab   :  { %98 = vst.msk [vmem:[#allocation4] sm:$0x3] %vm16_vm3, %v97_v51 }
  0xac   :  { %131 = shalt.err (!%p128_p4)
}
  0xad   :  { %s132_s20 = scalar_lea.hbm %s195_s2, 32 }
  0xae   :  { %p133_p5 = scmp.ne.s32.totalorder %s195_s2, %s132_s20  ;;  %p136_p6 = scmp.lt.u32.totalorder %s132_s20, %s195_s2 }
  0xb0   :  { %p138_p7 = pnand %p136_p6, %p133_p5 }
  0xb2   :  { %141 = shalt.err (!%p138_p7)
}
  0xb3   :  { %108 = dma.vmem_to_hbm [thread:$0]  %s106_s16, 32, %s195_s2, [#allocation5]  }
  0xb4   :  { %142 = dma.done.wait [#allocation5], 32  }
  0xb5   :  { %143 = vsyncadd [#allocation5], 4294967264 }
  0xb6   :  { %112 = vsyncpa [#allocation5], 1 }

</bundles_post_ra>
